<compile_context>
chip_gen: v5e
topology: v5e:2x2
jax: 0.10.0
libtpu: 0.0.40
codegen_flags: <defaults>
</compile_context>

<pallas_src>
import jax
import jax.numpy as jnp
from jax.experimental import pallas as pl
from jax.experimental.pallas import tpu as pltpu

FEATURE_SIZE = 128
NUM_CLASSES = 130

LANE = 128            # lane width (last-dim alignment)
SUBLANE = 8           # sublane width (second-to-last-dim alignment)
MAX_BATCH_TILE = 2048  # large tiles amortize per-grid-step overhead


def _round_up(x, m):
    return (x + m - 1) // m * m


def _linear_kernel(x_ref, w_ref, b_ref, o_ref):
    # x_ref : [tb, F]  (compute dtype, e.g. bf16)
    # w_ref : [F, Npad] (compute dtype)   b_ref : [1, Npad] (f32)
    # o_ref : [tb, Npad] (f32)
    acc = jnp.dot(x_ref[...], w_ref[...], preferred_element_type=jnp.float32)
    o_ref[...] = acc + b_ref[...]


def prepare_linear_params(weight, bias, compute_dtype=jnp.bfloat16):
    """One-time layout prep (done at model-load time, not per call).

    - Transpose PyTorch [N, F] weight -> [F, Npad] so the kernel does a plain
      `x @ w` on the MXU (no in-kernel transpose).
    - Zero-pad the class dim to a multiple of 128 for lane-dense stores.
    - Cast the weight to the MXU-native compute dtype (bf16 by default);
      bias stays f32 and is added to the f32 accumulator.
    """
    N, F = weight.shape
    assert bias.shape == (N,)
    n_pad = _round_up(N, LANE)
    w_t = (jnp.zeros((F, n_pad), compute_dtype)
           .at[:, :N].set(weight.T.astype(compute_dtype)))
    b2d = (jnp.zeros((1, n_pad), jnp.float32)
           .at[:, :N].set(bias.astype(jnp.float32)))
    return w_t, b2d


def face_recognition_forward(x, w_t, b2d, num_classes=NUM_CLASSES, *,
                             slice_output=True):
    """y = x @ W^T + b, with W/b already prepared by prepare_linear_params.

    If slice_output=False, returns the padded (b_pad, n_pad) f32 buffer
    (rows >= B equal the bias, columns >= num_classes are zero) so a fused
    downstream consumer can avoid the extra HBM slice copy.
    """
    B, F = x.shape
    F2, n_pad = w_t.shape
    assert F == F2 and b2d.shape == (1, n_pad) and num_classes <= n_pad
    compute_dtype = w_t.dtype

    if x.dtype != compute_dtype:
        x = x.astype(compute_dtype)

    # Pad batch only to the sublane multiple (8); partial last grid tile is
    # masked by Pallas, so no round-up-to-tile garbage work.
    b_pad = _round_up(B, SUBLANE)
    if b_pad != B:
        x = jnp.zeros((b_pad, F), compute_dtype).at[:B].set(x)

    # Batch tiling: >=2 grid steps once the batch is big enough so the
    # "parallel" axis really splits across the two TCs on v7x; capped at
    # MAX_BATCH_TILE so huge batches stream with the weight VMEM-resident.
    if b_pad >= 2 * SUBLANE:
        tb = min(MAX_BATCH_TILE, _round_up(pl.cdiv(b_pad, 2), SUBLANE))
    else:
        tb = b_pad
    grid = (pl.cdiv(b_pad, tb),)

    csize = jnp.dtype(compute_dtype).itemsize
    cost = pl.CostEstimate(
        flops=2 * b_pad * F * n_pad,
        transcendentals=0,
        bytes_accessed=csize * (b_pad * F + F * n_pad)
        + 4 * (n_pad + b_pad * n_pad),
    )

    out = pl.pallas_call(
        _linear_kernel,
        out_shape=jax.ShapeDtypeStruct((b_pad, n_pad), jnp.float32),
        grid=grid,
        in_specs=[
            pl.BlockSpec((tb, F), lambda i: (i, 0)),       # x: streamed per tile
            pl.BlockSpec((F, n_pad), lambda i: (0, 0)),    # weight: VMEM-resident
            pl.BlockSpec((1, n_pad), lambda i: (0, 0)),    # bias:   VMEM-resident
        ],
        out_specs=pl.BlockSpec((tb, n_pad), lambda i: (i, 0)),
        compiler_params=pltpu.CompilerParams(
            # Batch tiles are independent -> shard across TCs on v7x megacore.
            dimension_semantics=("parallel",),
            # Max double-buffered footprint at tb=2048 is ~5.2 MiB; 32 MiB is
            # comfortably under v7x's 64 MiB physical VMEM.
            vmem_limit_bytes=32 * 1024 * 1024,
        ),
        cost_estimate=cost,
    )(x, w_t, b2d)

    if not slice_output:
        return out
    # Drop batch padding and the lane-padding of the class dim.
    return out[:B, :num_classes]


if __name__ == "__main__":
    key = jax.random.PRNGKey(0)
    kx, kw, kb = jax.random.split(key, 3)

    batch = 8

    # Deterministic synthetic parameters (same shapes as torch.nn.Linear(128, 130)).
    bound = 1.0 / (FEATURE_SIZE ** 0.5)
    weight = jax.random.uniform(
        kw, (NUM_CLASSES, FEATURE_SIZE), jnp.float32, minval=-bound, maxval=bound
    )
    bias = jax.random.uniform(
        kb, (NUM_CLASSES,), jnp.float32, minval=-bound, maxval=bound
    )
    x = jax.random.normal(kx, (batch, FEATURE_SIZE), jnp.float32)

    # One-time layout prep (would be done at model-load time).
    w_t, b2d = prepare_linear_params(weight, bias)

    y = face_recognition_forward(x, w_t, b2d, NUM_CLASSES)
    y = jax.block_until_ready(y)

    # Reference with the same bf16 input rounding (f32 accumulation), matching
    # the MXU-native path used in the kernel.
    xb = x.astype(jnp.bfloat16).astype(jnp.float32)
    wb = weight.astype(jnp.bfloat16).astype(jnp.float32)
    y_ref = xb @ wb.T + bias

    assert y.shape == (batch, NUM_CLASSES)
    assert jnp.allclose(y, y_ref, atol=1e-4, rtol=1e-4)
    # Sanity check vs. the pure-f32 reference (differs only by bf16 input rounding).
    assert jnp.allclose(y, x @ weight.T + bias, atol=5e-2, rtol=5e-2)

    print("KERNEL_OK")
</pallas_src>

<mosaic_0001>
module attributes {stable_mosaic.version = 11 : i64} {
  func.func @_linear_kernel(%arg0: i32, %arg1: memref<8x128xbf16, #tpu.memory_space<vmem>>, %arg2: memref<128x256xbf16, #tpu.memory_space<vmem>>, %arg3: memref<1x256xf32, #tpu.memory_space<vmem>>, %arg4: memref<8x256xf32, #tpu.memory_space<vmem>>) attributes {dimension_semantics = [#tpu.dimension_semantics<parallel>], iteration_bounds = array<i64: 1>, scalar_prefetch = 0 : i64, scratch_operands = 0 : i64, tpu.core_type = #tpu.core_type<tc>, window_params = [{transform_indices = @transform_0, window_bounds = array<i64: 8, 128>}, {pipeline_mode = #tpu.pipeline_mode<synchronous>, transform_indices = @transform_1, window_bounds = array<i64: 128, 256>}, {pipeline_mode = #tpu.pipeline_mode<synchronous>, transform_indices = @transform_2, window_bounds = array<i64: 1, 256>}, {transform_indices = @transform_3, window_bounds = array<i64: 8, 256>}]} {
    %c0 = arith.constant 0 : index
    %c0_0 = arith.constant 0 : index
    %0 = vector.load %arg1[%c0, %c0_0] : memref<8x128xbf16, #tpu.memory_space<vmem>>, vector<8x128xbf16>
    %c0_1 = arith.constant 0 : index
    %c0_2 = arith.constant 0 : index
    %1 = vector.load %arg2[%c0_1, %c0_2] : memref<128x256xbf16, #tpu.memory_space<vmem>>, vector<128x256xbf16>
    %cst = arith.constant dense<0.000000e+00> : vector<8x256xf32>
    %2 = tpu.matmul %0, %1, %cst {dimension_numbers = #tpu.dot_dimension_numbers<[1], [0], [0], [1], [0, 0, 1, 1], [], []>} : vector<8x128xbf16>, vector<128x256xbf16>, vector<8x256xf32> -> vector<8x256xf32>
    %c0_3 = arith.constant 0 : index
    %c0_4 = arith.constant 0 : index
    %3 = vector.load %arg3[%c0_3, %c0_4] : memref<1x256xf32, #tpu.memory_space<vmem>>, vector<1x256xf32>
    %4 = vector.broadcast %3 : vector<1x256xf32> to vector<8x256xf32>
    %5 = arith.addf %2, %4 : vector<8x256xf32>
    %c0_5 = arith.constant 0 : index
    %c0_6 = arith.constant 0 : index
    %6 = vector.load %arg4[%c0_5, %c0_6] : memref<8x256xf32, #tpu.memory_space<vmem>>, vector<8x256xf32>
    tpu.vector_store %arg4[%c0_5, %c0_6], %5 {strides = array<i32>} : memref<8x256xf32, #tpu.memory_space<vmem>>, vector<8x256xf32>,
    return
  }
  func.func @transform_0(%arg0: i32) -> (i32, i32) {
    %c0_i32 = arith.constant 0 : i32
    %c0_i32_0 = arith.constant 0 : i32
    return %arg0, %c0_i32 : i32, i32
  }
  func.func @transform_1(%arg0: i32) -> (i32, i32) {
    %c0_i32 = arith.constant 0 : i32
    %c0_i32_0 = arith.constant 0 : i32
    %c0_i32_1 = arith.constant 0 : i32
    return %c0_i32, %c0_i32_0 : i32, i32
  }
  func.func @transform_2(%arg0: i32) -> (i32, i32) {
    %c0_i32 = arith.constant 0 : i32
    %c0_i32_0 = arith.constant 0 : i32
    %c0_i32_1 = arith.constant 0 : i32
    return %c0_i32, %c0_i32_0 : i32, i32
  }
  func.func @transform_3(%arg0: i32) -> (i32, i32) {
    %c0_i32 = arith.constant 0 : i32
    %c0_i32_0 = arith.constant 0 : i32
    return %arg0, %c0_i32 : i32, i32
  }
}

</mosaic_0001>

<bundles_post_ra>
// kernel: tpu_custom_call.1
= control target key start
LH: loop header
LB: loop body
LE: loop exit
PB: predicated region body
PF: predicated region fallthrough
CT: control target
= control target key end

     0   :  { %8 = vsyncpa [#allocation3], 0  ;;  %s433_s0 = inlined_call_operand.hbm [shape: bf16[8,128], index: 0, kind: input, shape index: {}]   ;;  %s434_s1 = inlined_call_operand.hbm [shape: bf16[128,256], index: 1, kind: input, shape index: {}]   ;;  %s435_s2 = inlined_call_operand.hbm [shape: f32[1,256], index: 2, kind: input, shape index: {}]   ;;  %s436_s3 = inlined_call_operand.hbm [shape: f32[8,256], index: 3, kind: output, shape index: {}]  }
   0x1   :  { %9 = vsyncpa [#allocation6], 0  ;;  %s26_s14 = sshll.u32 %s434_s1, 4  ;;  %s27_s14 = int_to_ptr.hbm [resolvable:$true] %s26_s14 }
   0x2   :  { %10 = vsyncpa [#allocation4], 0  ;;  %s395_s15 = smov [#allocation5]   ;;  %s16_s19 = sshll.u32 %s433_s0, 4  ;;  %s17_s19 = int_to_ptr.hbm [resolvable:$true] %s16_s19 }
   0x3   :  { %s28_s16 = sshll.u32 %s395_s15, 4  ;;  %s396_s20 = smov 128   ;;  %s29_s16 = int_to_ptr.vmem [resolvable:$true] %s28_s16 }
   0x4   :  { %s397_s21 = smov 8   ;;  %s398_s22 = smov [#allocation2]  }
   0x5   :  { %34 = dma.hbm_to_vmem [thread:$0]  %s27_s14, 2048, %s29_s16, [#allocation6], %s396_s20, %s396_s20, %s397_s21  }
   0x6   :  { %s18_s23 = sshll.u32 %s398_s22, 4  ;;  %s40_s26 = sshll.u32 %s435_s2, 4  ;;  %s19_s23 = int_to_ptr.vmem [resolvable:$true] %s18_s23  ;;  %s41_s26 = int_to_ptr.hbm [resolvable:$true] %s40_s26 }
   0x7   :  { %21 = dma.hbm_to_vmem [thread:$0]  %s17_s19, 64, %s19_s23, [#allocation3]  }
   0x8   :  { %s399_s1 = smov [#allocation7]  }
   0x9   :  { %s42_s27 = sshll.u32 %s399_s1, 4  ;;  %s43_s27 = int_to_ptr.vmem [resolvable:$true] %s42_s27 }
   0xa   :  { %45 = dma.hbm_to_vmem [thread:$0]  %s41_s26, 32, %s43_s27, [#allocation6]  }
   0xb   :  { %389 = dma.done.wait [#allocation3], 64  }
   0xc   :  { %390 = vsyncadd [#allocation3], 4294967232 }
   0xd   :  { %391 = dma.done.wait [#allocation6], 2080  }
   0xe   :  { %392 = vsyncadd [#allocation6], 4294965216  ;;  %v265_v0 = vld [vmem:[#allocation5 + $0x70] sm:$0xf]  ;;  %v286_v1 = vld [vmem:[#allocation5 + $0x74] sm:$0xf0] }
   0xf   :  { %v285_v2 = vld [vmem:[#allocation5 + $0x74] sm:$0xf]  ;;  %v266_v3 = vor.u32 %v286_v1, %v265_v0  ;;  %v267_v4 = vld [vmem:[#allocation5 + $0x78] sm:$0xf0]  ;;  %v257_v5 = vld [vmem:[#allocation5 + $0x60] sm:$0xf] }
  0x10   :  { %v284_v6 = vld [vmem:[#allocation5 + $0x64] sm:$0xf0]  ;;  %v270_v7 = vor.u32 %v285_v2, %v267_v4  ;;  %v283_v8 = vld [vmem:[#allocation5 + $0x64] sm:$0xf]  ;;  %v259_v9 = vld [vmem:[#allocation5 + $0x68] sm:$0xf0] }
  0x11   :  { %161 = vmatpush.bf16.msra.mxu0 %v266_v3  ;;  %v258_v10 = vor.u32 %v284_v6, %v257_v5  ;;  %v262_v11 = vor.u32 %v283_v8, %v259_v9  ;;  %v249_v12 = vld [vmem:[#allocation5 + $0x50] sm:$0xf]  ;;  %v282_v13 = vld [vmem:[#allocation5 + $0x54] sm:$0xf0]  ;;  %v281_v14 = vld [vmem:[#allocation5 + $0x54] sm:$0xf] }
  0x12   :  { %174 = vmatpush.bf16.msra.mxu1 %v270_v7  ;;  %v251_v15 = vld [vmem:[#allocation5 + $0x58] sm:$0xf0]  ;;  %v250_v16 = vor.u32 %v282_v13, %v249_v12  ;;  %v241_v18 = vld [vmem:[#allocation5 + $0x40] sm:$0xf]  ;;  %v280_v19 = vld [vmem:[#allocation5 + $0x44] sm:$0xf0] }
  0x13   :  { %v254_v17 = vor.u32 %v281_v14, %v251_v15  ;;  %v279_v20 = vld [vmem:[#allocation5 + $0x44] sm:$0xf]  ;;  %v243_v21 = vld [vmem:[#allocation5 + $0x48] sm:$0xf0]  ;;  %v242_v22 = vor.u32 %v280_v19, %v241_v18  ;;  %v233_v24 = vld [vmem:[#allocation5 + $0x30] sm:$0xf] }
  0x14   :  { %v246_v23 = vor.u32 %v279_v20, %v243_v21  ;;  %v278_v25 = vld [vmem:[#allocation5 + $0x34] sm:$0xf0]  ;;  %v277_v26 = vld [vmem:[#allocation5 + $0x34] sm:$0xf]  ;;  %v235_v27 = vld [vmem:[#allocation5 + $0x38] sm:$0xf0] }
  0x15   :  { %162 = vmatpush.bf16.msra.mxu0 %v258_v10  ;;  %v234_v28 = vor.u32 %v278_v25, %v233_v24  ;;  %v238_v29 = vor.u32 %v277_v26, %v235_v27  ;;  %v225_v30 = vld [vmem:[#allocation5 + $0x20] sm:$0xf]  ;;  %v276_v31 = vld [vmem:[#allocation5 + $0x24] sm:$0xf0]  ;;  %v275_v32 = vld [vmem:[#allocation5 + $0x24] sm:$0xf] }
  0x16   :  { %175 = vmatpush.bf16.msra.mxu1 %v262_v11  ;;  %v227_v33 = vld [vmem:[#allocation5 + $0x28] sm:$0xf0]  ;;  %v226_v34 = vor.u32 %v276_v31, %v225_v30  ;;  %v217_v36 = vld [vmem:[#allocation5 + $0x10] sm:$0xf]  ;;  %v274_v37 = vld [vmem:[#allocation5 + $0x14] sm:$0xf0] }
  0x17   :  { %v230_v35 = vor.u32 %v275_v32, %v227_v33  ;;  %v273_v38 = vld [vmem:[#allocation5 + $0x14] sm:$0xf]  ;;  %v219_v39 = vld [vmem:[#allocation5 + $0x18] sm:$0xf0]  ;;  %v218_v40 = vor.u32 %v274_v37, %v217_v36  ;;  %v209_v42 = vld [vmem:[#allocation5] sm:$0xf] }
  0x18   :  { %v222_v41 = vor.u32 %v273_v38, %v219_v39  ;;  %v272_v43 = vld [vmem:[#allocation5 + $0x4] sm:$0xf0]  ;;  %v271_v44 = vld [vmem:[#allocation5 + $0x4] sm:$0xf]  ;;  %v211_v45 = vld [vmem:[#allocation5 + $0x8] sm:$0xf0] }
  0x19   :  { %163 = vmatpush.bf16.msra.mxu0 %v250_v16  ;;  %v210_v46 = vor.u32 %v272_v43, %v209_v42  ;;  %v214_v47 = vor.u32 %v271_v44, %v211_v45  ;;  %v58_v48 = vld [vmem:[#allocation2] sm:$0xf]  ;;  %v75_v49 = vld [vmem:[#allocation7] sm:$0x3]  ;;  %s400_s0 = smov [#allocation8]   ;;  %s196_s30 = sshll.u32 %s436_s3, 4  ;;  %s197_s30 = int_to_ptr.hbm [resolvable:$true] %s196_s30 }
  0x1a   :  { %176 = vmatpush.bf16.msra.mxu1 %v254_v17  ;;  %v77_v50 = vperm.slane %v75_v49, 0  ;;  %v78_v51 = vperm.slane %v75_v49, 1  ;;  %s194_s2 = sshll.u32 %s400_s0, 4  ;;  %s195_s2 = int_to_ptr.vmem [resolvable:$true] %s194_s2 }
  0x1d   :  { %164 = vmatpush.bf16.msra.mxu0 %v242_v22 }
  0x1e   :  { %177 = vmatpush.bf16.msra.mxu1 %v246_v23 }
  0x21   :  { %165 = vmatpush.bf16.msra.mxu0 %v234_v28 }
  0x22   :  { %178 = vmatpush.bf16.msra.mxu1 %v238_v29 }
  0x25   :  { %166 = vmatpush.bf16.msra.mxu0 %v226_v34 }
  0x26   :  { %179 = vmatpush.bf16.msra.mxu1 %v230_v35 }
  0x29   :  { %167 = vmatpush.bf16.msra.mxu0 %v218_v40 }
  0x2a   :  { %180 = vmatpush.bf16.msra.mxu1 %v222_v41 }
  0x2d   :  { %168 = vmatpush.bf16.msra.mxu0 %v210_v46 }
  0x2e   :  { %181 = vmatpush.bf16.msra.mxu1 %v214_v47 }
  0x30   :  { %169 = vmatmul.bf16.vlgmr.msra.gmra.mxu0 %v58_v48 }
  0x31   :  { %182 = vmatmul.bf16.vlgmr.msra.gmra.mxu1 %v58_v48 }
  0xad   :  { %v170_v52 = vpop.f32.mrf.mxu0 }
  0xae   :  { %v171_v53 = vadd.f32 %v170_v52, %v77_v50  ;;  %v183_v54 = vpop.f32.mrf.mxu1 }
  0xaf   :  { %v184_v55 = vadd.f32 %v183_v54, %v78_v51 }
  0xb0   :  { %187 = vst [vmem:[#allocation8] sm:$0xff] %v171_v53 }
  0xb1   :  { %188 = vst [vmem:[#allocation8 + $0x8] sm:$0xff] %v184_v55 }
  0xb2   :  { %199 = dma.vmem_to_hbm [thread:$0]  %s195_s2, 256, %s197_s30, [#allocation4]  }
  0xb5   :  { %v172_v56 = vpop.f32.mrf.mxu0 }
  0xb6   :  { %v185_v57 = vpop.f32.mrf.mxu1 }
  0xb7   :  { %393 = dma.done.wait [#allocation4], 256  }
  0xb8   :  { %394 = vsyncadd [#allocation4], 4294967040 }
  0xb9   :  { %204 = vsyncpa [#allocation3], 1 }
  0xba   :  { %205 = vsyncpa [#allocation6], 1 }
  0xbb   :  { %206 = vsyncpa [#allocation4], 1 }

</bundles_post_ra>
